<compile_context>
chip_gen: v5e
topology: v5e:2x2
jax: 0.10.0
libtpu: 0.0.40
codegen_flags: <defaults>
</compile_context>

<pallas_src>
import math

import jax
import jax.numpy as jnp
from jax.experimental import pallas as pl
from jax.experimental.pallas import tpu as pltpu


def _round_up(n, m):
    return ((n + m - 1) // m) * m


def _scaler_kernel(x_ref, p_ref, o_ref):
    # x_ref: (TILE_R, W) tile of packed frames.
    # p_ref: (2, W) fused params -- row 0 = tiled mean, row 1 = tiled 1/std.
    m = p_ref[0:1, :]         # (1, W) -> sublane-broadcast over TILE_R
    inv_s = p_ref[1:2, :]     # (1, W)
    x = x_ref[...].astype(jnp.float32)
    o_ref[...] = ((x - m) * inv_s).astype(o_ref.dtype)


def _scaler_pallas(x2, params):
    """x2: (rows, W) packed frames; params: (2, W) fused mean / 1/std."""
    rows, W = x2.shape
    itemsize = x2.dtype.itemsize

    # Generation-aware VMEM budget.
    try:
        info = pltpu.get_tpu_info()
        vmem_cap = getattr(info, "vmem_capacity_bytes", 64 * 1024 * 1024)
    except Exception:  # be conservative if hardware query is unavailable
        vmem_cap = 64 * 1024 * 1024

    if vmem_cap >= 96 * 1024 * 1024:
        # v5e / v6e: 128 MiB physical VMEM -> big tiles, raised scoped limit.
        vmem_limit = 64 * 1024 * 1024
        target_rows = 4096
    else:
        # v7x: 64 MiB VMEM per TC -> keep default scoped limit, smaller tiles.
        vmem_limit = 32 * 1024 * 1024
        target_rows = 2048

    # Cap the row tile so ~5 buffers (double-buffered in+out, params, headroom)
    # fit comfortably under the scoped VMEM limit.
    row_bytes = W * itemsize
    cap = max(8, ((vmem_limit // 5) // row_bytes) // 8 * 8)
    target_rows = min(target_rows, cap)

    # Guarantee >= 2 grid steps when possible so the "parallel" axis actually
    # shards across both TensorCores on v7x megacore.
    if rows <= 8:
        tile_r = rows  # equals full dim -> valid even if not a multiple of 8
    else:
        tile_r = min(target_rows, _round_up(pl.cdiv(rows, 2), 8))

    grid = (pl.cdiv(rows, tile_r),)

    cost = pl.CostEstimate(
        flops=2 * rows * W,
        transcendentals=0,
        bytes_accessed=2 * rows * W * itemsize + 2 * W * 4,
    )

    return pl.pallas_call(
        _scaler_kernel,
        out_shape=jax.ShapeDtypeStruct((rows, W), x2.dtype),
        grid_spec=pltpu.PrefetchScalarGridSpec(
            num_scalar_prefetch=0,
            grid=grid,
            in_specs=[
                pl.BlockSpec((tile_r, W), lambda r: (r, 0)),
                pl.BlockSpec((2, W), lambda r: (0, 0)),
            ],
            out_specs=pl.BlockSpec((tile_r, W), lambda r: (r, 0)),
        ),
        compiler_params=pltpu.CompilerParams(
            dimension_semantics=("parallel",),
            vmem_limit_bytes=vmem_limit,
        ),
        cost_estimate=cost,
    )(x2, params)


class MLFBScaler:
    """JAX/Pallas equivalent of MLFBScalerLayer: forward(x) = (x - mean) / std.

    mean/std are fixed (non-trainable) per-feature parameters; all parameter
    preprocessing (reciprocal, tiling, fusing) is hoisted to __init__ so the
    per-call path is just a reshape + one pallas_call.
    """

    def __init__(self, mean, std):
        self.mean = jnp.asarray(mean, jnp.float32)
        self.inv_std = 1.0 / jnp.asarray(std, jnp.float32)
        self.D = int(self.mean.shape[0])
        # Group G frames per row so lane width W = G*D is a multiple of 128
        # (lane-dense, unmasked stores). For D=80: G=8, W=640.
        self.G = math.lcm(self.D, 128) // self.D
        self.W = self.G * self.D
        # Fused (2, W) parameter block, built once.
        self.params = jnp.stack(
            [jnp.tile(self.mean, self.G), jnp.tile(self.inv_std, self.G)],
            axis=0,
        )

    def __call__(self, x, *, min_pallas_bytes=1 << 20):
        B, T, D = x.shape
        assert D == self.D, f"feature dim {D} != scaler dim {self.D}"
        N = B * T

        ragged = (N % self.G) != 0
        tiny = N * D * x.dtype.itemsize < min_pallas_bytes
        if ragged or tiny:
            # Fused XLA elementwise is already at HBM roofline (1 read +
            # 1 write) and avoids the pad/slice copies the packed layout
            # would otherwise need on ragged shapes.
            y = (x.astype(jnp.float32) - self.mean) * self.inv_std
            return y.astype(x.dtype)

        rows = N // self.G
        x2 = x.reshape(rows, self.W)          # contiguous view, no copy
        out2 = _scaler_pallas(x2, self.params)
        return out2.reshape(B, T, D)


if __name__ == "__main__":
    key = jax.random.PRNGKey(0)
    B, T, D = 2, 16, 80  # small shapes: batch, frames, mel-filterbank bins

    kx, km, kv = jax.random.split(key, 3)
    x = jax.random.normal(kx, (B, T, D), dtype=jnp.float32)

    # Deterministic synthetic "scaler" parameters (mean_ and sqrt(var_)).
    mean = jax.random.normal(km, (D,), dtype=jnp.float32)
    var = jax.random.uniform(kv, (D,), dtype=jnp.float32, minval=0.5, maxval=2.0)
    std = jnp.sqrt(var)

    scaler = MLFBScaler(mean, std)

    # Force the Pallas path (the default fast path would absorb tiny inputs).
    out = scaler(x, min_pallas_bytes=0)
    out = jax.block_until_ready(out)

    # Pure-JAX reference (same broadcasting semantics as the PyTorch module).
    ref = (x - mean[None, None, :]) / std[None, None, :]
    assert out.shape == (B, T, D)
    # Kernel multiplies by a precomputed 1/std; reference divides (~1 ulp diff).
    assert jnp.allclose(out, ref, atol=1e-5, rtol=1e-5)

    # Also sanity-check the fused-jnp fallback (ragged / tiny input path).
    x_rag = x[:, :15, :]
    out_rag = jax.block_until_ready(scaler(x_rag))
    ref_rag = (x_rag - mean[None, None, :]) / std[None, None, :]
    assert jnp.allclose(out_rag, ref_rag, atol=1e-5, rtol=1e-5)

    print("KERNEL_OK")
</pallas_src>

<mosaic_0001>
module attributes {stable_mosaic.version = 11 : i64} {
  func.func @_scaler_kernel(%arg0: i32, %arg1: memref<4x640xf32, #tpu.memory_space<vmem>>, %arg2: memref<2x640xf32, #tpu.memory_space<vmem>>, %arg3: memref<4x640xf32, #tpu.memory_space<vmem>>) attributes {dimension_semantics = [#tpu.dimension_semantics<parallel>], iteration_bounds = array<i64: 1>, scalar_prefetch = 0 : i64, scratch_operands = 0 : i64, tpu.core_type = #tpu.core_type<tc>, window_params = [{transform_indices = @transform_0, window_bounds = array<i64: 4, 640>}, {pipeline_mode = #tpu.pipeline_mode<synchronous>, transform_indices = @transform_1, window_bounds = array<i64: 2, 640>}, {transform_indices = @transform_2, window_bounds = array<i64: 4, 640>}]} {
    %c0 = arith.constant 0 : index
    %c0_0 = arith.constant 0 : index
    %0 = vector.load %arg2[%c0, %c0_0] : memref<2x640xf32, #tpu.memory_space<vmem>>, vector<1x640xf32>
    %c1 = arith.constant 1 : index
    %c0_1 = arith.constant 0 : index
    %1 = vector.load %arg2[%c1, %c0_1] : memref<2x640xf32, #tpu.memory_space<vmem>>, vector<1x640xf32>
    %c0_2 = arith.constant 0 : index
    %c0_3 = arith.constant 0 : index
    %2 = vector.load %arg1[%c0_2, %c0_3] : memref<4x640xf32, #tpu.memory_space<vmem>>, vector<4x640xf32>
    %3 = vector.broadcast %0 : vector<1x640xf32> to vector<4x640xf32>
    %4 = arith.subf %2, %3 : vector<4x640xf32>
    %5 = vector.broadcast %1 : vector<1x640xf32> to vector<4x640xf32>
    %6 = arith.mulf %4, %5 : vector<4x640xf32>
    %c0_4 = arith.constant 0 : index
    %c0_5 = arith.constant 0 : index
    %7 = vector.load %arg3[%c0_4, %c0_5] : memref<4x640xf32, #tpu.memory_space<vmem>>, vector<4x640xf32>
    tpu.vector_store %arg3[%c0_4, %c0_5], %6 {strides = array<i32>} : memref<4x640xf32, #tpu.memory_space<vmem>>, vector<4x640xf32>,
    return
  }
  func.func @transform_0(%arg0: i32) -> (i32, i32) {
    %c0_i32 = arith.constant 0 : i32
    %c0_i32_0 = arith.constant 0 : i32
    return %arg0, %c0_i32 : i32, i32
  }
  func.func @transform_1(%arg0: i32) -> (i32, i32) {
    %c0_i32 = arith.constant 0 : i32
    %c0_i32_0 = arith.constant 0 : i32
    %c0_i32_1 = arith.constant 0 : i32
    return %c0_i32, %c0_i32_0 : i32, i32
  }
  func.func @transform_2(%arg0: i32) -> (i32, i32) {
    %c0_i32 = arith.constant 0 : i32
    %c0_i32_0 = arith.constant 0 : i32
    return %arg0, %c0_i32 : i32, i32
  }
}

</mosaic_0001>

<bundles_post_ra>
// kernel: tpu_custom_call.1
= control target key start
LH: loop header
LB: loop body
LE: loop exit
PB: predicated region body
PF: predicated region fallthrough
CT: control target
= control target key end

     0   :  { %7 = vsyncpa [#allocation3], 0  ;;  %s212_s0 = inlined_call_operand.hbm [shape: f32[4,640], index: 0, kind: input, shape index: {}]   ;;  %s213_s1 = inlined_call_operand.hbm [shape: f32[2,640], index: 1, kind: input, shape index: {}]   ;;  %s214_s2 = inlined_call_operand.hbm [shape: f32[4,640], index: 2, kind: output, shape index: {}]  }
   0x1   :  { %8 = vsyncpa [#allocation6], 0 }
   0x2   :  { %9 = vsyncpa [#allocation4], 0  ;;  %s15_s11 = sshll.u32 %s212_s0, 4  ;;  %s181_s12 = smov [#allocation2]   ;;  %s16_s11 = int_to_ptr.hbm [resolvable:$true] %s15_s11 }
   0x3   :  { %s17_s13 = sshll.u32 %s181_s12, 4  ;;  %s26_s16 = sshll.u32 %s213_s1, 4  ;;  %s18_s13 = int_to_ptr.vmem [resolvable:$true] %s17_s13  ;;  %s27_s16 = int_to_ptr.hbm [resolvable:$true] %s26_s16 }
   0x4   :  { %20 = dma.hbm_to_vmem [thread:$0]  %s16_s11, 320, %s18_s13, [#allocation3]  }
   0x5   :  { %s182_s17 = smov [#allocation5]  }
   0x6   :  { %s28_s18 = sshll.u32 %s182_s17, 4  ;;  %s29_s18 = int_to_ptr.vmem [resolvable:$true] %s28_s18 }
   0x7   :  { %31 = dma.hbm_to_vmem [thread:$0]  %s27_s16, 160, %s29_s18, [#allocation6]  }
   0x8   :  { %175 = dma.done.wait [#allocation3], 320  }
   0x9   :  { %176 = vsyncadd [#allocation3], 4294966976 }
   0xa   :  { %177 = dma.done.wait [#allocation6], 160  }
   0xb   :  { %178 = vsyncadd [#allocation6], 4294967136  ;;  %vm55_vm0 = vcmask 1043456   ;;  %v40_v0 = vld [vmem:[#allocation5] ss:$2 sm:$0x1f] }
   0xc   :  { %v42_v1 = vld [vmem:[#allocation5 + $0x1] ss:$2 sm:$0x1f]  ;;  %v47_v2 = vperm.slane %v40_v0, 0  ;;  %v48_v3 = vperm.slane %v40_v0, 1  ;;  %v49_v6 = vperm.slane %v40_v0, 2 }
   0xd   :  { %v64_v4 = vperm.slane %v42_v1, 0  ;;  %v65_v5 = vperm.slane %v42_v1, 1  ;;  %v50_v7 = vperm.slane %v40_v0, 3  ;;  %v66_v8 = vperm.slane %v42_v1, 2  ;;  %v45_v10 = vld [vmem:[#allocation2 + $0x10] sm:$0xf] }
   0xe   :  { %v67_v9 = vperm.slane %v42_v1, 3  ;;  %v43_v11 = vld [vmem:[#allocation2] sm:$0xff]  ;;  %v53_v12 = vrot.slane %v48_v3, 4  ;;  %v51_v14 = vperm.slane %v40_v0, 4  ;;  %v68_v15 = vperm.slane %v42_v1, 4  ;;  %v44_v16 = vld [vmem:[#allocation2 + $0x8] sm:$0xff] }
   0xf   :  { %v70_v13 = vrot.slane %v65_v5, 4  ;;  %v54_v17 = vrot.slane %v50_v7, 4  ;;  %s183_s0 = smov [#allocation7]   ;;  %s89_s21 = sshll.u32 %s214_s2, 4  ;;  %s90_s21 = int_to_ptr.hbm [resolvable:$true] %s89_s21 }
  0x10   :  { %v71_v18 = vrot.slane %v67_v9, 4  ;;  %v56_v19 = vsel %vm55_vm0, %v47_v2, %v53_v12  ;;  %v62_v21 = vsub.f32 %v45_v10, %v51_v14  ;;  %s87_s1 = sshll.u32 %s183_s0, 4  ;;  %s88_s1 = int_to_ptr.vmem [resolvable:$true] %s87_s1 }
  0x11   :  { %v72_v20 = vsel %vm55_vm0, %v64_v4, %v70_v13  ;;  %v60_v22 = vsub.f32 %v43_v11, %v56_v19  ;;  %v57_v23 = vsel %vm55_vm0, %v49_v6, %v54_v17 }
  0x12   :  { %v73_v24 = vsel %vm55_vm0, %v66_v8, %v71_v18  ;;  %v61_v25 = vsub.f32 %v44_v16, %v57_v23  ;;  %v78_v26 = vmul.f32 %v68_v15, %v62_v21 }
  0x13   :  { %v76_v27 = vmul.f32 %v72_v20, %v60_v22 }
  0x14   :  { %v77_v28 = vmul.f32 %v73_v24, %v61_v25  ;;  %81 = vst [vmem:[#allocation7 + $0x10] sm:$0xf] %v78_v26 }
  0x15   :  { %79 = vst [vmem:[#allocation7] sm:$0xff] %v76_v27 }
  0x16   :  { %80 = vst [vmem:[#allocation7 + $0x8] sm:$0xff] %v77_v28 }
  0x17   :  { %92 = dma.vmem_to_hbm [thread:$0]  %s88_s1, 320, %s90_s21, [#allocation4]  }
  0x18   :  { %179 = dma.done.wait [#allocation4], 320  }
  0x19   :  { %180 = vsyncadd [#allocation4], 4294966976 }
  0x1a   :  { %97 = vsyncpa [#allocation3], 1 }
  0x1b   :  { %98 = vsyncpa [#allocation6], 1 }
  0x1c   :  { %99 = vsyncpa [#allocation4], 1 }

</bundles_post_ra>
